<compile_context>
chip_gen: v7x
topology: tpu7x:2x2x1
jax: 0.10.0
libtpu: 0.0.40
codegen_flags: <defaults>
</compile_context>

<pallas_src>
import jax
import jax.numpy as jnp
from jax.experimental import pallas as pl
from jax.experimental.pallas import tpu as pltpu


# ---------------- model config ----------------
INPUT_2D_DIM = 2
EMBEDDING_DIM = 30
D_IN = INPUT_2D_DIM + EMBEDDING_DIM          # 32
HIDDEN = 64
D_OUT = 2
SKIP_LAYER = 2                               # opt.arch.skip_warp = [2]
LAYER_DIMS = [
    (D_IN, HIDDEN),                          # li=0 (k_in forced to D_IN)
    (HIDDEN, HIDDEN),                        # li=1
    (HIDDEN + D_IN, HIDDEN),                 # li=2 (skip: += D_IN)
    (HIDDEN, D_OUT),                         # li=3 (last, no relu)
]

CHUNK = 128                                  # rows per inner sub-chunk (vreg-resident)
MAX_TILE = 4096                              # rows per grid step (upper bound)


def _local_warp_kernel(uvf_ref,
                       w02_ref, w1_ref, w2t_ref, w3_ref,
                       b0_ref, b1_ref, b2_ref, b3_ref,
                       out_ref):
    """Fused 4-layer warp MLP for one tile of points.

    Packed-weight layout (host side, see _pack_params):
      W02  (32, 128) = [W0 | W2_bot]     (the two matmuls that consume uvf)
      W1p  (128, 64) = [[W1], [0]]
      W2tp (64, 128) = [0 | W2_top]
      W3p  (128, 2)  = [[0], [W3]]
      b0p  (1, 128)  = [b0 | 0]
      b2p  (1, 128)  = [0 | b2]
    Lanes 0:63 carry the layer-0 path, lanes 64:127 the layer-2 path, so the
    skip-concat needs no in-kernel concat and no lane slicing.
    """
    w02 = w02_ref[...]
    w1p = w1_ref[...]
    w2tp = w2t_ref[...]
    w3p = w3_ref[...]
    b0p = b0_ref[...]
    b1 = b1_ref[...]
    b2p = b2_ref[...]
    b3 = b3_ref[...]

    n_chunks = out_ref.shape[0] // CHUNK

    def body(c, carry):
        r0 = pl.multiple_of(c * CHUNK, CHUNK)
        x = uvf_ref[pl.ds(r0, CHUNK), :]                              # (C,32) bf16

        # layer-0 columns (0:63) + layer-2 skip contribution (64:127), one matmul
        g = jnp.dot(x, w02, preferred_element_type=jnp.float32)      # (C,128) f32

        # layer 0 + relu (lanes 64:127 are discarded by W1p's zero rows)
        f0 = jnp.maximum(g + b0p, 0.0).astype(jnp.bfloat16)          # (C,128)

        # layer 1 + relu
        f1 = jnp.dot(f0, w1p, preferred_element_type=jnp.float32) + b1
        f1 = jnp.maximum(f1, 0.0).astype(jnp.bfloat16)               # (C,64)

        # layer 2 (skip): cat([f1, uvf]) @ W2 + b2 == f1@W2_top + uvf@W2_bot + b2
        t = jnp.dot(f1, w2tp, preferred_element_type=jnp.float32) + g + b2p
        t = jnp.maximum(t, 0.0).astype(jnp.bfloat16)                 # (C,128)

        # layer 3 (no relu); W3p's zero rows ignore the garbage lanes 0:63 of t
        o = jnp.dot(t, w3p, preferred_element_type=jnp.float32) + b3
        out_ref[pl.ds(r0, CHUNK), :] = o.astype(out_ref.dtype)
        return carry

    jax.lax.fori_loop(0, n_chunks, body, 0, unroll=(n_chunks <= 4))


def _pack_params(params):
    """Pack/pad the 4 Linear layers into lane-aligned bf16 weights + f32 biases."""
    (w0, b0), (w1, b1), (w2, b2), (w3, b3) = params
    w2_top, w2_bot = w2[:HIDDEN], w2[HIDDEN:]
    bf, f32 = jnp.bfloat16, jnp.float32
    z_hh = jnp.zeros((HIDDEN, HIDDEN), w1.dtype)

    w02 = jnp.concatenate([w0, w2_bot], axis=1).astype(bf)                   # (32,128)
    w1p = jnp.concatenate([w1, z_hh], axis=0).astype(bf)                     # (128,64)
    w2tp = jnp.concatenate([z_hh, w2_top], axis=1).astype(bf)                # (64,128)
    w3p = jnp.concatenate(
        [jnp.zeros((HIDDEN, D_OUT), w3.dtype), w3], axis=0).astype(bf)       # (128,2)
    b0p = jnp.concatenate(
        [b0, jnp.zeros((1, HIDDEN), b0.dtype)], axis=1).astype(f32)          # (1,128)
    b2p = jnp.concatenate(
        [jnp.zeros((1, HIDDEN), b2.dtype), b2], axis=1).astype(f32)          # (1,128)
    return [w02, w1p, w2tp, w3p, b0p, b1.astype(f32), b2p, b3.astype(f32)]


def _choose_tile(n):
    """Largest power-of-two tile <= MAX_TILE that still gives >= 2 grid steps
    (so ("parallel",) can shard over both TensorCores on v7x), never < CHUNK."""
    tile = MAX_TILE
    while tile > CHUNK and pl.cdiv(n, tile) < 2:
        tile //= 2
    return max(tile, CHUNK)


def local_warp_pallas(uvf, params):
    """uvf: (N, D_IN) float32; params: list of (W[d_in,d_out], b[1,d_out]).

    (If loading a real PyTorch checkpoint, nn.Linear stores W as (out,in);
     transpose once on the host before calling this.)
    """
    n, d_in = uvf.shape
    assert d_in == D_IN
    assert MAX_TILE % CHUNK == 0

    tile = _choose_tile(n)
    n_steps = pl.cdiv(n, tile)
    n_pad = n_steps * tile

    uvf_bf = uvf.astype(jnp.bfloat16)
    if n_pad != n:
        uvf_bf = jnp.pad(uvf_bf, ((0, n_pad - n), (0, 0)))

    packed = _pack_params(params)

    def full2d(arr):
        return pl.BlockSpec(arr.shape, lambda i: (0, 0))

    in_specs = [pl.BlockSpec((tile, D_IN), lambda i: (i, 0))]
    in_specs += [full2d(p) for p in packed]

    # advisory cost estimate (actual padded-weight MXU work)
    flops_per_pt = 2 * (D_IN * 2 * HIDDEN        # W02
                        + 2 * HIDDEN * HIDDEN    # W1p
                        + HIDDEN * 2 * HIDDEN    # W2tp
                        + 2 * HIDDEN * D_OUT)    # W3p
    bytes_params = sum(int(p.size) * p.dtype.itemsize for p in packed)
    cost = pl.CostEstimate(
        flops=flops_per_pt * n_pad,
        transcendentals=0,
        bytes_accessed=n_pad * (D_IN * 2 + D_OUT * 4) + bytes_params)

    out = pl.pallas_call(
        _local_warp_kernel,
        out_shape=jax.ShapeDtypeStruct((n_pad, D_OUT), jnp.float32),
        grid_spec=pltpu.PrefetchScalarGridSpec(
            num_scalar_prefetch=0,
            grid=(n_steps,),
            in_specs=in_specs,
            out_specs=pl.BlockSpec((tile, D_OUT), lambda i: (i, 0)),
        ),
        compiler_params=pltpu.CompilerParams(
            dimension_semantics=("parallel",),
            vmem_limit_bytes=32 * 1024 * 1024),
        cost_estimate=cost,
    )(uvf_bf, *packed)

    # TODO(synk): fusing the downstream warp consumer (ray-bending / grid_sample
    # prep) here would remove the narrow (N, 2) HBM store entirely.
    return out[:n]


def local_warp_ref(uvf, params):
    """Pure-JAX reference mirroring the PyTorch forward (concat-based skip),
    using the same bf16-operand / f32-accumulate numerics as the kernel."""
    uvf_bf = uvf.astype(jnp.bfloat16)
    feat = uvf_bf
    n_layers = len(params)
    for li, (w, b) in enumerate(params):
        if li == SKIP_LAYER:
            feat = jnp.concatenate([feat, uvf_bf], axis=-1)
        feat = jnp.dot(feat, w.astype(jnp.bfloat16),
                       preferred_element_type=jnp.float32) + b
        if li != n_layers - 1:
            feat = jnp.maximum(feat, 0.0).astype(jnp.bfloat16)
    return feat


def init_params(key):
    """Deterministic synthetic Linear params (torch default-style uniform)."""
    params = []
    for li, (k_in, k_out) in enumerate(LAYER_DIMS):
        key, kw, kb = jax.random.split(key, 3)
        bound = 1.0 / jnp.sqrt(float(k_in))
        w = jax.random.uniform(kw, (k_in, k_out), jnp.float32, -bound, bound)
        b = jax.random.uniform(kb, (1, k_out), jnp.float32, -bound, bound)
        params.append((w, b))
    return params


if __name__ == "__main__":
    key = jax.random.PRNGKey(0)
    key, k_uvf, k_params = jax.random.split(key, 3)

    # uvf: [batch, HW, 2 + embedding_dim] like L2G-NeRF; flatten points for the kernel.
    batch, hw = 2, 1024
    uvf_bhw = jax.random.normal(k_uvf, (batch, hw, D_IN), jnp.float32)
    uvf = uvf_bhw.reshape(batch * hw, D_IN)

    params = init_params(k_params)

    warp = local_warp_pallas(uvf, params)
    warp = jax.block_until_ready(warp)

    ref = local_warp_ref(uvf, params)
    assert warp.shape == (batch * hw, D_OUT)
    assert jnp.allclose(warp, ref, atol=2e-2, rtol=2e-2), \
        float(jnp.max(jnp.abs(warp - ref)))

    # reshape back to [batch, HW, 2] like the torch module's output convention
    warp = warp.reshape(batch, hw, D_OUT)

    print("KERNEL_OK")
</pallas_src>

<mosaic_0001>
module attributes {stable_mosaic.version = 11 : i64} {
  func.func @_local_warp_kernel(%arg0: i32, %arg1: memref<1024x32xbf16, #tpu.memory_space<vmem>>, %arg2: memref<32x128xbf16, #tpu.memory_space<vmem>>, %arg3: memref<128x64xbf16, #tpu.memory_space<vmem>>, %arg4: memref<64x128xbf16, #tpu.memory_space<vmem>>, %arg5: memref<128x2xbf16, #tpu.memory_space<vmem>>, %arg6: memref<1x128xf32, #tpu.memory_space<vmem>>, %arg7: memref<1x64xf32, #tpu.memory_space<vmem>>, %arg8: memref<1x128xf32, #tpu.memory_space<vmem>>, %arg9: memref<1x2xf32, #tpu.memory_space<vmem>>, %arg10: memref<1024x2xf32, #tpu.memory_space<vmem>>) attributes {dimension_semantics = [#tpu.dimension_semantics<parallel>], iteration_bounds = array<i64: 2>, scalar_prefetch = 0 : i64, scratch_operands = 0 : i64, tpu.core_type = #tpu.core_type<tc>, window_params = [{transform_indices = @transform_0, window_bounds = array<i64: 1024, 32>}, {pipeline_mode = #tpu.pipeline_mode<synchronous>, transform_indices = @transform_1, window_bounds = array<i64: 32, 128>}, {pipeline_mode = #tpu.pipeline_mode<synchronous>, transform_indices = @transform_2, window_bounds = array<i64: 128, 64>}, {pipeline_mode = #tpu.pipeline_mode<synchronous>, transform_indices = @transform_3, window_bounds = array<i64: 64, 128>}, {pipeline_mode = #tpu.pipeline_mode<synchronous>, transform_indices = @transform_4, window_bounds = array<i64: 128, 2>}, {pipeline_mode = #tpu.pipeline_mode<synchronous>, transform_indices = @transform_5, window_bounds = array<i64: 1, 128>}, {pipeline_mode = #tpu.pipeline_mode<synchronous>, transform_indices = @transform_6, window_bounds = array<i64: 1, 64>}, {pipeline_mode = #tpu.pipeline_mode<synchronous>, transform_indices = @transform_7, window_bounds = array<i64: 1, 128>}, {pipeline_mode = #tpu.pipeline_mode<synchronous>, transform_indices = @transform_8, window_bounds = array<i64: 1, 2>}, {transform_indices = @transform_9, window_bounds = array<i64: 1024, 2>}]} {
    %c0 = arith.constant 0 : index
    %c0_0 = arith.constant 0 : index
    %0 = vector.load %arg2[%c0, %c0_0] : memref<32x128xbf16, #tpu.memory_space<vmem>>, vector<32x128xbf16>
    %c0_1 = arith.constant 0 : index
    %c0_2 = arith.constant 0 : index
    %1 = vector.load %arg3[%c0_1, %c0_2] : memref<128x64xbf16, #tpu.memory_space<vmem>>, vector<128x64xbf16>
    %c0_3 = arith.constant 0 : index
    %c0_4 = arith.constant 0 : index
    %2 = vector.load %arg4[%c0_3, %c0_4] : memref<64x128xbf16, #tpu.memory_space<vmem>>, vector<64x128xbf16>
    %c0_5 = arith.constant 0 : index
    %c0_6 = arith.constant 0 : index
    %3 = vector.load %arg5[%c0_5, %c0_6] : memref<128x2xbf16, #tpu.memory_space<vmem>>, vector<128x2xbf16>
    %c0_7 = arith.constant 0 : index
    %c0_8 = arith.constant 0 : index
    %4 = vector.load %arg6[%c0_7, %c0_8] : memref<1x128xf32, #tpu.memory_space<vmem>>, vector<1x128xf32>
    %c0_9 = arith.constant 0 : index
    %c0_10 = arith.constant 0 : index
    %5 = vector.load %arg7[%c0_9, %c0_10] : memref<1x64xf32, #tpu.memory_space<vmem>>, vector<1x64xf32>
    %c0_11 = arith.constant 0 : index
    %c0_12 = arith.constant 0 : index
    %6 = vector.load %arg8[%c0_11, %c0_12] : memref<1x128xf32, #tpu.memory_space<vmem>>, vector<1x128xf32>
    %c0_13 = arith.constant 0 : index
    %c0_14 = arith.constant 0 : index
    %7 = vector.load %arg9[%c0_13, %c0_14] : memref<1x2xf32, #tpu.memory_space<vmem>>, vector<1x2xf32>
    %c0_i32 = arith.constant 0 : i32
    %c8_i32 = arith.constant 8 : i32
    %8 = arith.addi %c0_i32, %c8_i32 : i32
    %c1_i32 = arith.constant 1 : i32
    scf.for %arg11 = %c0_i32 to %8 step %c1_i32  : i32 {
      %c128_i32 = arith.constant 128 : i32
      %9 = arith.muli %arg11, %c128_i32 : i32
      %10 = tpu.assume_multiple %9, 128 : i32
      %11 = arith.index_cast %10 : i32 to index
      %c0_16 = arith.constant 0 : index
      %12 = vector.load %arg1[%11, %c0_16] : memref<1024x32xbf16, #tpu.memory_space<vmem>>, vector<128x32xbf16>
      %cst = arith.constant dense<0.000000e+00> : vector<128x128xf32>
      %13 = tpu.matmul %12, %0, %cst {dimension_numbers = #tpu.dot_dimension_numbers<[1], [0], [0], [1], [0, 0, 1, 1], [], []>} : vector<128x32xbf16>, vector<32x128xbf16>, vector<128x128xf32> -> vector<128x128xf32>
      %14 = vector.broadcast %4 : vector<1x128xf32> to vector<128x128xf32>
      %15 = arith.addf %13, %14 : vector<128x128xf32>
      %cst_17 = arith.constant 0.000000e+00 : f32
      %16 = vector.broadcast %cst_17 : f32 to vector<128x128xf32>
      %17 = arith.maximumf %15, %16 : vector<128x128xf32>
      %18 = arith.truncf %17 : vector<128x128xf32> to vector<128x128xbf16>
      %cst_18 = arith.constant dense<0.000000e+00> : vector<128x64xf32>
      %19 = tpu.matmul %18, %1, %cst_18 {dimension_numbers = #tpu.dot_dimension_numbers<[1], [0], [0], [1], [0, 0, 1, 1], [], []>} : vector<128x128xbf16>, vector<128x64xbf16>, vector<128x64xf32> -> vector<128x64xf32>
      %20 = vector.broadcast %5 : vector<1x64xf32> to vector<128x64xf32>
      %21 = arith.addf %19, %20 : vector<128x64xf32>
      %cst_19 = arith.constant 0.000000e+00 : f32
      %22 = vector.broadcast %cst_19 : f32 to vector<128x64xf32>
      %23 = arith.maximumf %21, %22 : vector<128x64xf32>
      %24 = arith.truncf %23 : vector<128x64xf32> to vector<128x64xbf16>
      %cst_20 = arith.constant dense<0.000000e+00> : vector<128x128xf32>
      %25 = tpu.matmul %24, %2, %cst_20 {dimension_numbers = #tpu.dot_dimension_numbers<[1], [0], [0], [1], [0, 0, 1, 1], [], []>} : vector<128x64xbf16>, vector<64x128xbf16>, vector<128x128xf32> -> vector<128x128xf32>
      %26 = arith.addf %25, %13 : vector<128x128xf32>
      %27 = vector.broadcast %6 : vector<1x128xf32> to vector<128x128xf32>
      %28 = arith.addf %26, %27 : vector<128x128xf32>
      %cst_21 = arith.constant 0.000000e+00 : f32
      %29 = vector.broadcast %cst_21 : f32 to vector<128x128xf32>
      %30 = arith.maximumf %28, %29 : vector<128x128xf32>
      %31 = arith.truncf %30 : vector<128x128xf32> to vector<128x128xbf16>
      %cst_22 = arith.constant dense<0.000000e+00> : vector<128x2xf32>
      %32 = tpu.matmul %31, %3, %cst_22 {dimension_numbers = #tpu.dot_dimension_numbers<[1], [0], [0], [1], [0, 0, 1, 1], [], []>} : vector<128x128xbf16>, vector<128x2xbf16>, vector<128x2xf32> -> vector<128x2xf32>
      %33 = vector.broadcast %7 : vector<1x2xf32> to vector<128x2xf32>
      %34 = arith.addf %32, %33 : vector<128x2xf32>
      %35 = arith.index_cast %10 : i32 to index
      %c0_23 = arith.constant 0 : index
      %36 = vector.load %arg10[%35, %c0_23] : memref<1024x2xf32, #tpu.memory_space<vmem>>, vector<128x2xf32>
      tpu.vector_store %arg10[%35, %c0_23], %34 {strides = array<i32>} : memref<1024x2xf32, #tpu.memory_space<vmem>>, vector<128x2xf32>,
    }
    %c8_i32_15 = arith.constant 8 : i32
    return
  }
  func.func @transform_0(%arg0: i32) -> (i32, i32) {
    %c0_i32 = arith.constant 0 : i32
    %c0_i32_0 = arith.constant 0 : i32
    return %arg0, %c0_i32 : i32, i32
  }
  func.func @transform_1(%arg0: i32) -> (i32, i32) {
    %c0_i32 = arith.constant 0 : i32
    %c0_i32_0 = arith.constant 0 : i32
    %c0_i32_1 = arith.constant 0 : i32
    return %c0_i32, %c0_i32_0 : i32, i32
  }
  func.func @transform_2(%arg0: i32) -> (i32, i32) {
    %c0_i32 = arith.constant 0 : i32
    %c0_i32_0 = arith.constant 0 : i32
    %c0_i32_1 = arith.constant 0 : i32
    return %c0_i32, %c0_i32_0 : i32, i32
  }
  func.func @transform_3(%arg0: i32) -> (i32, i32) {
    %c0_i32 = arith.constant 0 : i32
    %c0_i32_0 = arith.constant 0 : i32
    %c0_i32_1 = arith.constant 0 : i32
    return %c0_i32, %c0_i32_0 : i32, i32
  }
  func.func @transform_4(%arg0: i32) -> (i32, i32) {
    %c0_i32 = arith.constant 0 : i32
    %c0_i32_0 = arith.constant 0 : i32
    %c0_i32_1 = arith.constant 0 : i32
    return %c0_i32, %c0_i32_0 : i32, i32
  }
  func.func @transform_5(%arg0: i32) -> (i32, i32) {
    %c0_i32 = arith.constant 0 : i32
    %c0_i32_0 = arith.constant 0 : i32
    %c0_i32_1 = arith.constant 0 : i32
    return %c0_i32, %c0_i32_0 : i32, i32
  }
  func.func @transform_6(%arg0: i32) -> (i32, i32) {
    %c0_i32 = arith.constant 0 : i32
    %c0_i32_0 = arith.constant 0 : i32
    %c0_i32_1 = arith.constant 0 : i32
    return %c0_i32, %c0_i32_0 : i32, i32
  }
  func.func @transform_7(%arg0: i32) -> (i32, i32) {
    %c0_i32 = arith.constant 0 : i32
    %c0_i32_0 = arith.constant 0 : i32
    %c0_i32_1 = arith.constant 0 : i32
    return %c0_i32, %c0_i32_0 : i32, i32
  }
  func.func @transform_8(%arg0: i32) -> (i32, i32) {
    %c0_i32 = arith.constant 0 : i32
    %c0_i32_0 = arith.constant 0 : i32
    %c0_i32_1 = arith.constant 0 : i32
    return %c0_i32, %c0_i32_0 : i32, i32
  }
  func.func @transform_9(%arg0: i32) -> (i32, i32) {
    %c0_i32 = arith.constant 0 : i32
    %c0_i32_0 = arith.constant 0 : i32
    return %arg0, %c0_i32 : i32, i32
  }
}

</mosaic_0001>

<bundles_post_ra>
// kernel: tpu_custom_call.1
= control target key start
LH: loop header
LB: loop body
LE: loop exit
PB: predicated region body
PF: predicated region fallthrough
CT: control target
= control target key end

     0   :  { %s1564_s30 = smov 0   ;;  %s2068_s0 = inlined_call_operand.vmem [shape: bf16[2048,32], index: 0, kind: input, shape index: {}]   ;;  %s2069_s1 = inlined_call_operand.vmem [shape: bf16[32,128], index: 1, kind: input, shape index: {}]   ;;  %s2070_s2 = inlined_call_operand.vmem [shape: bf16[128,64], index: 2, kind: input, shape index: {}]   ;;  %s2071_s3 = inlined_call_operand.vmem [shape: bf16[64,128], index: 3, kind: input, shape index: {}]   ;;  %s2072_s4 = inlined_call_operand.vmem [shape: bf16[128,2], index: 4, kind: input, shape index: {}]   ;;  %s2073_s5 = inlined_call_operand.vmem [shape: f32[1,128], index: 5, kind: input, shape index: {}]   ;;  %s2074_s6 = inlined_call_operand.vmem [shape: f32[1,64], index: 6, kind: input, shape index: {}]   ;;  %s2075_s7 = inlined_call_operand.vmem [shape: f32[1,128], index: 7, kind: input, shape index: {}]   ;;  %s2076_s8 = inlined_call_operand.vmem [shape: f32[1,2], index: 8, kind: input, shape index: {}]   ;;  %s2077_s9 = inlined_call_operand.vmem [shape: f32[2048,2], index: 9, kind: output, shape index: {}]  }
   0x1 LB: > { %s1233_s10 = sadd.s32 4294967295, %s1508_s30   ;;  %p1237_p0 = scmp.ge.s32.totalorder %s1508_s30, 1  ;;  %s1508_s30 = sphi %s1564_s30, %s19_s30  }
   0x2   : > { %p288_p1 = scmp.lt.s32.totalorder %s1508_s30, 3 }
   0x4   : > { %p289_p2 = pnand %p1237_p0, %p288_p1 }
   0x5   : > { %s1238_s11 = sshll.u32 (!%p289_p2), %s1233_s10, 7  ;;  %v1575_v0 = vld [vmem:[%s2069_s1] sm:$0xf] (!%p289_p2)  ;;  %v1580_v1 = vld [vmem:[%s2069_s1 + $0x4] sm:$0xf] (!%p289_p2)  ;;  %s1822_s23 = smov (!%p289_p2), 0  }
   0x6   : > { %292 = sbr.rel (%p289_p2) target bundleno = 950 (0x3b6), region = 56  ;;  %2078 = vst [vmem:[#allocation2_spill] sm:$0xff] (!%p289_p2), %v1575_v0  ;;  %2079 = vst [vmem:[#allocation3_spill] sm:$0xff] (!%p289_p2), %v1580_v1  ;;  %p325_p3 = scmp.lt.s32.totalorder (!%p289_p2), %s1238_s11, 255  ;;  %v1585_v2 = vld [vmem:[%s2069_s1 + $0x8] sm:$0xf] (!%p289_p2) }
   0x7   : > { %2080 = vst [vmem:[#allocation4_spill] sm:$0xff] (!%p289_p2), %v1585_v2  ;;  %v1590_v3 = vld [vmem:[%s2069_s1 + $0xc] sm:$0xf] (!%p289_p2)  ;;  %v1595_v4 = vld [vmem:[%s2070_s2] sm:$0xf] (!%p289_p2) }
   0x8   : > { %2081 = vst [vmem:[#allocation5_spill] sm:$0xff] (!%p289_p2), %v1590_v3  ;;  %2082 = vst [vmem:[#allocation6_spill] sm:$0xff] (!%p289_p2), %v1595_v4  ;;  %v1600_v5 = vld [vmem:[%s2070_s2 + $0x4] sm:$0xf] (!%p289_p2)  ;;  %v1605_v6 = vld [vmem:[%s2070_s2 + $0x8] sm:$0xf] (!%p289_p2) }
   0x9   : > { %2083 = vst [vmem:[#allocation7_spill] sm:$0xff] (!%p289_p2), %v1600_v5  ;;  %2084 = vst [vmem:[#allocation8_spill] sm:$0xff] (!%p289_p2), %v1605_v6  ;;  %v1610_v7 = vld [vmem:[%s2070_s2 + $0xc] sm:$0xf] (!%p289_p2)  ;;  %v1615_v8 = vld [vmem:[%s2070_s2 + $0x10] sm:$0xf] (!%p289_p2) }
   0xa   : > { %2085 = vst [vmem:[#allocation9_spill] sm:$0xff] (!%p289_p2), %v1610_v7  ;;  %2086 = vst [vmem:[#allocation10_spill] sm:$0xff] (!%p289_p2), %v1615_v8  ;;  %v1620_v9 = vld [vmem:[%s2070_s2 + $0x14] sm:$0xf] (!%p289_p2)  ;;  %v1625_v10 = vld [vmem:[%s2070_s2 + $0x18] sm:$0xf] (!%p289_p2) }
   0xb   : > { %2087 = vst [vmem:[#allocation11_spill] sm:$0xff] (!%p289_p2), %v1620_v9  ;;  %2088 = vst [vmem:[#allocation12_spill] sm:$0xff] (!%p289_p2), %v1625_v10  ;;  %v1630_v11 = vld [vmem:[%s2070_s2 + $0x1c] sm:$0xf] (!%p289_p2)  ;;  %v1635_v12 = vld [vmem:[%s2070_s2 + $0x20] sm:$0xf] (!%p289_p2) }
   0xc   : > { %2089 = vst [vmem:[#allocation13_spill] sm:$0xff] (!%p289_p2), %v1630_v11  ;;  %2090 = vst [vmem:[#allocation14_spill] sm:$0xff] (!%p289_p2), %v1635_v12  ;;  %v1640_v13 = vld [vmem:[%s2070_s2 + $0x24] sm:$0xf] (!%p289_p2)  ;;  %v1655_v14 = vld [vmem:[%s2070_s2 + $0x28] sm:$0xf] (!%p289_p2) }
   0xd   : > { %s2125_s11 = smov (!%p325_p3, %s1238_s11), 255  ;;  %2091 = vst [vmem:[#allocation15_spill] sm:$0xff] %v1640_v13  ;;  %2092 = vst [vmem:[#allocation16_spill] sm:$0xff] %v1655_v14  ;;  %v1660_v15 = vld [vmem:[%s2070_s2 + $0x2c] sm:$0xf] }
   0xe   : > { %s1239_s17 = sshll.u32 %s2125_s11, 2  ;;  %s1241_s18 = sshll.u32 %s2125_s11, 3  ;;  %2093 = vst [vmem:[#allocation17_spill] sm:$0xff] %v1660_v15  ;;  %v1665_v16 = vld [vmem:[%s2070_s2 + $0x30] sm:$0xf] }
   0xf   : > { %s1645_s25 = scalar_lea.vmem %s2068_s0, %s1239_s17  ;;  %s1650_s28 = scalar_lea.vmem %s2077_s9, %s1241_s18  ;;  %2094 = vst [vmem:[#allocation18_spill] sm:$0xff] %v1665_v16  ;;  %v1670_v17 = vld [vmem:[%s2070_s2 + $0x34] sm:$0xf]  ;;  %v1675_v18 = vld [vmem:[%s2070_s2 + $0x38] sm:$0xf] }
  0x10   : > { %2095 = vst [vmem:[#allocation19_spill] sm:$0xff] %v1670_v17  ;;  %2096 = vst [vmem:[#allocation20_spill] sm:$0xff] %v1675_v18  ;;  %v1680_v19 = vld [vmem:[%s2070_s2 + $0x3c] sm:$0xf]  ;;  %v1685_v20 = vld [vmem:[%s2071_s3] sm:$0xf] }
  0x11   : > { %2097 = vst [vmem:[#allocation21_spill] sm:$0xff] %v1680_v19  ;;  %2098 = vst [vmem:[#allocation22_spill] sm:$0xff] %v1685_v20  ;;  %v1690_v21 = vld [vmem:[%s2071_s3 + $0x4] sm:$0xf]  ;;  %v1695_v22 = vld [vmem:[%s2071_s3 + $0x8] sm:$0xf] }
  0x12   : > { %2099 = vst [vmem:[#allocation23_spill] sm:$0xff] %v1690_v21  ;;  %2100 = vst [vmem:[#allocation24_spill] sm:$0xff] %v1695_v22  ;;  %v1700_v23 = vld [vmem:[%s2071_s3 + $0xc] sm:$0xf]  ;;  %v1705_v24 = vld [vmem:[%s2071_s3 + $0x10] sm:$0xf] }
  0x13   : > { %v1710_v25 = vld [vmem:[%s2071_s3 + $0x14] sm:$0xf]  ;;  %v1715_v26 = vld [vmem:[%s2071_s3 + $0x18] sm:$0xf]  ;;  %v1720_v27 = vld [vmem:[%s2071_s3 + $0x1c] sm:$0xf] }
  0x14   : > { %v1725_v28 = vld [vmem:[%s2072_s4] sm:$0xf]  ;;  %v1730_v29 = vld [vmem:[%s2072_s4 + $0x4] sm:$0xf]  ;;  %v1735_v30 = vld [vmem:[%s2072_s4 + $0x8] sm:$0xf] }
  0x15   : > { %v1740_v31 = vld [vmem:[%s2072_s4 + $0xc] sm:$0xf]  ;;  %v1745_v32 = vld [vmem:[%s2072_s4 + $0x10] sm:$0xf]  ;;  %v1750_v33 = vld [vmem:[%s2072_s4 + $0x14] sm:$0xf] }
  0x16   : > { %v1755_v34 = vld [vmem:[%s2072_s4 + $0x18] sm:$0xf]  ;;  %v1760_v35 = vld [vmem:[%s2072_s4 + $0x1c] sm:$0xf]  ;;  %v1765_v36 = vld [vmem:[%s2072_s4 + $0x20] sm:$0xf] }
  0x17   : > { %v1770_v37 = vld [vmem:[%s2072_s4 + $0x24] sm:$0xf]  ;;  %v1775_v38 = vld [vmem:[%s2072_s4 + $0x28] sm:$0xf]  ;;  %v1780_v39 = vld [vmem:[%s2072_s4 + $0x2c] sm:$0xf] }
  0x18   : > { %v1785_v40 = vld [vmem:[%s2072_s4 + $0x30] sm:$0xf]  ;;  %v1790_v41 = vld [vmem:[%s2072_s4 + $0x34] sm:$0xf]  ;;  %v1795_v42 = vld [vmem:[%s2072_s4 + $0x38] sm:$0xf] }
  0x19   : > { %v1800_v43 = vld [vmem:[%s2072_s4 + $0x3c] sm:$0xf]  ;;  %v1805_v44 = vld [vmem:[%s2073_s5] ss:$0 sm:$0xff] }
  0x1a   : > { %v1810_v45 = vld [vmem:[%s2074_s6] ss:$0 sm:$0xff] }
  0x1b   : > { %v1815_v46 = vld [vmem:[%s2075_s7] ss:$0 sm:$0xff] }
  0x1c   : > { %v1820_v47 = vld [vmem:[%s2076_s8] ss:$0 sm:$0xff] }
  0x1d LB: >> { %v2101_v1 = vld [vmem:[#allocation3_spill] sm:$0xff]  ;;  %v2102_v0 = vld [vmem:[#allocation2_spill] sm:$0xff]  ;;  %v2103_v3 = vld [vmem:[#allocation5_spill] sm:$0xff]  ;;  %s1242_s24 = sshll.u32 %s1512_s23, 7  ;;  %vm464_vm0 = vcmask 261120   ;;  %vm831_vm1 = vcmask 523264   ;;  %s1512_s23 = sphi %s1822_s23, %s390_s23  }
  0x1e   : >> { %v1252_v48 = vcombine.low %v2102_v0, %v2101_v1  ;;  %v2104_v2 = vld [vmem:[#allocation4_spill] sm:$0xff]  ;;  %v2105_v5 = vld [vmem:[#allocation7_spill] sm:$0xff]  ;;  %v2106_v4 = vld [vmem:[#allocation6_spill] sm:$0xff]  ;;  %s392_s26 = sshra.s32 %s1242_s24, 3  ;;  %s2012_s29 = scalar_lea.vmem %s1650_s28, %s1242_s24  ;;  %vm1151_vm2 = vcmask 15360  }
  0x1f   : >> { %v1253_v49 = vcombine.low %v2104_v2, %v2103_v3  ;;  %v1264_v50 = vcombine.low %v2106_v4, %v2105_v5  ;;  %v2107_v7 = vld [vmem:[#allocation9_spill] sm:$0xff]  ;;  %v2108_v6 = vld [vmem:[#allocation8_spill] sm:$0xff]  ;;  %s1243_s27 = sshll.u32 %s392_s26, 2  ;;  %v2109_v9 = vld [vmem:[#allocation11_spill] sm:$0xff]  ;;  %s390_s23 = sadd.s32 1, %s1512_s23  }
  0x20   : >> { %v1265_v51 = vcombine.low %v2108_v6, %v2107_v7  ;;  %1350 = vmatprep.subr.bf16.mxu0 %v1252_v48  ;;  %v2110_v8 = vld [vmem:[#allocation10_spill] sm:$0xff]  ;;  %s395_s11 = scalar_lea.vmem %s1645_s25, %s1243_s27  ;;  %v2111_v11 = vld [vmem:[#allocation13_spill] sm:$0xff]  ;;  %v2112_v10 = vld [vmem:[#allocation12_spill] sm:$0xff]  ;;  %p387_p4 = scmp.ge.s32.totalorder %s390_s23, 8  }
  0x21   : >> { %1370 = vmatprep.subr.bf16.mxu1 %v1264_v50  ;;  %1351 = vmatpush3.bf16.msra.mxu0 %v1252_v48  ;;  %v1266_v52 = vcombine.low %v2110_v8, %v2109_v9  ;;  %v1490_v53 = vld [vmem:[%s395_s11] sm:$0xff]   ;;  %v1491_v54 = vld [vmem:[%s395_s11 + $0x8] sm:$0xff]   ;;  %v1492_v55 = vld [vmem:[%s395_s11 + $0x10] sm:$0xff]   ;;  %v1267_v56 = vcombine.low %v2112_v10, %v2111_v11 }
  0x22   : >> { %1371 = vmatpush3.bf16.msra.mxu1 %v1264_v50  ;;  %1352 = vmatprep.subr.bf16.mxu0 %v1253_v49  ;;  %v2113_v13 = vld [vmem:[#allocation15_spill] sm:$0xff]  ;;  %v2114_v12 = vld [vmem:[#allocation14_spill] sm:$0xff]  ;;  %v1493_v58 = vld [vmem:[%s395_s11 + $0x18] sm:$0xff]  }
  0x23   : >> { %1372 = vmatprep.subr.bf16.mxu1 %v1265_v51  ;;  %1354 = vmatprep.mubr.msk.bf16.mxu0 %vm464_vm0, %v1490_v53  ;;  %v1268_v57 = vcombine.low %v2114_v12, %v2113_v13  ;;  %v1494_v59 = vld [vmem:[%s395_s11 + $0x20] sm:$0xff]   ;;  %v2115_v15 = vld [vmem:[#allocation17_spill] sm:$0xff]  ;;  %v2116_v14 = vld [vmem:[#allocation16_spill] sm:$0xff]  ;;  %v1286_v12 = vcombine.low %v1725_v28, %v1730_v29 }
  0x24   : >> { %v1269_v60 = vcombine.low %v2116_v14, %v2115_v15  ;;  %v1495_v61 = vld [vmem:[%s395_s11 + $0x28] sm:$0xff]   ;;  %v1496_v62 = vld [vmem:[%s395_s11 + $0x30] sm:$0xff]   ;;  %v1497_v63 = vld [vmem:[%s395_s11 + $0x38] sm:$0xff]  }
  0x25   : >> { %1353 = vmatpush3.bf16.msra.mxu0 %v1253_v49  ;;  %v2117_v17 = vld [vmem:[#allocation19_spill] sm:$0xff]  ;;  %v2118_v16 = vld [vmem:[#allocation18_spill] sm:$0xff]  ;;  %v2119_v19 = vld [vmem:[#allocation21_spill] sm:$0xff] }
  0x26   : >> { %1373 = vmatpush3.bf16.msra.mxu1 %v1265_v51  ;;  %v1270_v48 = vcombine.low %v2118_v16, %v2117_v17  ;;  %v2120_v18 = vld [vmem:[#allocation20_spill] sm:$0xff]  ;;  %v2121_v21 = vld [vmem:[#allocation23_spill] sm:$0xff]  ;;  %v2122_v20 = vld [vmem:[#allocation22_spill] sm:$0xff] }
  0x27   : >> { %1374 = vmatprep.subr.bf16.mxu1 %v1266_v52  ;;  %v1271_v49 = vcombine.low %v2120_v18, %v2119_v19  ;;  %v1272_v50 = vcombine.low %v2122_v20, %v2121_v21  ;;  %v2123_v22 = vld [vmem:[#allocation24_spill] sm:$0xff] }
  0x28   : >> { %1355 = vmatmul.mubr.msk.bf16.vlgmr.msra.gmra.mrb[0].mxu0 %vm464_vm0, %v1491_v54  ;;  %v1273_v51 = vcombine.low %v2123_v22, %v1700_v23 }
  0x29   : >> { %1358 = vmatprep.mubr.msk.bf16.mxu0 %vm464_vm0, %v1492_v55  ;;  %1402 = vmatprep.subr.bf16.mxu0 %v1272_v50 }
  0x2a   : >> { %1375 = vmatpush3.bf16.msra.mxu1 %v1266_v52  ;;  %1403 = vmatpush3.bf16.msra.mxu0 %v1272_v50  ;;  %v1274_v52 = vcombine.low %v1705_v24, %v1710_v25 }
  0x2b   : >> { %1376 = vmatprep.subr.bf16.mxu1 %v1267_v56  ;;  %1404 = vmatprep.subr.bf16.mxu0 %v1273_v51 }
  0x2e   : >> { %1377 = vmatpush3.bf16.msra.mxu1 %v1267_v56  ;;  %1405 = vmatpush3.bf16.msra.mxu0 %v1273_v51 }
  0x2f   : >> { %1378 = vmatprep.subr.bf16.mxu1 %v1268_v57  ;;  %1406 = vmatprep.subr.bf16.mxu0 %v1274_v52 }
  0x30   : >> { %1359 = vmatmul.mubr.msk.bf16.gmra.mrb[4].mxu0 %vm464_vm0, %v1493_v58 }
  0x31   : >> { %1362 = vmatprep.mubr.msk.bf16.mxu0 %vm464_vm0, %v1494_v59 }
  0x32   : >> { %1379 = vmatpush3.bf16.msra.mxu1 %v1268_v57  ;;  %1407 = vmatpush3.bf16.msra.mxu0 %v1274_v52 }
  0x33   : >> { %1380 = vmatprep.subr.bf16.mxu1 %v1269_v60 }
  0x36   : >> { %1381 = vmatpush3.bf16.msra.mxu1 %v1269_v60 }
  0x37   : >> { %1382 = vmatprep.subr.bf16.mxu1 %v1270_v48 }
  0x38   : >> { %1363 = vmatmul.mubr.msk.bf16.gmra.mrb[8].mxu0 %vm464_vm0, %v1495_v61 }
  0x39   : >> { %1366 = vmatprep.mubr.msk.bf16.mxu0 %vm464_vm0, %v1496_v62 }
  0x3a   : >> { %1383 = vmatpush3.bf16.msra.mxu1 %v1270_v48 }
  0x3b   : >> { %1384 = vmatprep.subr.bf16.mxu1 %v1271_v49 }
  0x3e   : >> { %1385 = vmatpush3.bf16.msra.mxu1 %v1271_v49 }
  0x3f   : >> { %1458 = vmatprep.subr.bf16.mxu1 %v1286_v12 }
  0x40   : >> { %1367 = vmatmul.mubr.msk.bf16.gmra.mrb[12].mxu0 %vm464_vm0, %v1497_v63 }
  0xfb   : >> { %v1865_v53 = vpop.f32.mrb[0].mxu0 }
  0xfc   : >> { %v594_v54 = vadd.f32 %v1865_v53, %v1805_v44  ;;  %v1869_v55 = vpop.f32.mrb[1].mxu0 }
  0xfd   : >> { %v592_v56 = vadd.f32 %v1805_v44, %v1869_v55  ;;  %v1873_v57 = vpop.f32.mrb[2].mxu0 }
  0xfe   : >> { %v595_v58 = vadd.f32 %v1873_v57, %v1805_v44  ;;  %v1877_v59 = vpop.f32.mrb[3].mxu0  ;;  %v610_v61 = vmax.f32 %v594_v54, 0.0 }
  0xff   : >> { %v593_v60 = vadd.f32 %v1805_v44, %v1877_v59  ;;  %v608_v63 = vmax.f32 %v592_v56, 0.0 }
 0x100   : >> { %v611_v62 = vmax.f32 %v595_v58, 0.0 }
 0x101   : >> { %v609_v48 = vmax.f32 %v593_v60, 0.0 }
 0x102   : >> { %v625_v49 = vpack.c.bf16 %v611_v62, %v610_v61 }
 0x103   : >> { %v1881_v50 = vpop.f32.mrb[4].mxu0  ;;  %v624_v51 = vpack.c.bf16 %v609_v48, %v608_v63 }
 0x104   : >> { %v598_v52 = vadd.f32 %v1881_v50, %v1805_v44  ;;  %v1885_v0 = vpop.f32.mrb[5].mxu0 }
 0x105   : >> { %v596_v1 = vadd.f32 %v1805_v44, %v1885_v0  ;;  %v1889_v2 = vpop.f32.mrb[6].mxu0  ;;  %1386 = vmatprep.mubr.bf16.mxu1 %v624_v51 }
 0x106   : >> { %v599_v54 = vadd.f32 %v1889_v2, %v1805_v44  ;;  %v1893_v56 = vpop.f32.mrb[7].mxu0  ;;  %1387 = vmatmul.mubr.bf16.vlgmr.msra.gmra.mrb[0].mxu1 %v625_v49  ;;  %v614_v60 = vmax.f32 %v598_v52, 0.0 }
 0x107   : >> { %v597_v58 = vadd.f32 %v1805_v44, %v1893_v56  ;;  %v612_v62 = vmax.f32 %v596_v1, 0.0  ;;  %1466 = vmatpush3.bf16.msra.mxu1 %v1286_v12 }
 0x108   : >> { %v615_v61 = vmax.f32 %v599_v54, 0.0 }
 0x109   : >> { %v613_v63 = vmax.f32 %v597_v58, 0.0 }
 0x10a   : >> { %v627_v48 = vpack.c.bf16 %v615_v61, %v614_v60 }
 0x10b   : >> { %v1897_v3 = vpop.f32.mrb[8].mxu0  ;;  %v626_v4 = vpack.c.bf16 %v613_v63, %v612_v62 }
 0x10c   : >> { %v602_v51 = vadd.f32 %v1897_v3, %v1805_v44  ;;  %v1901_v5 = vpop.f32.mrb[9].mxu0 }
 0x10d   : >> { %v600_v6 = vadd.f32 %v1805_v44, %v1901_v5  ;;  %v1905_v49 = vpop.f32.mrb[10].mxu0  ;;  %1390 = vmatprep.mubr.bf16.mxu1 %v626_v4 }
 0x10e   : >> { %v603_v52 = vadd.f32 %v1905_v49, %v1805_v44  ;;  %v1909_v1 = vpop.f32.mrb[11].mxu0  ;;  %1391 = vmatmul.mubr.bf16.gmra.mrb[4].mxu1 %v627_v48  ;;  %v618_v58 = vmax.f32 %v602_v51, 0.0 }
 0x10f   : >> { %v601_v54 = vadd.f32 %v1805_v44, %v1909_v1  ;;  %v616_v61 = vmax.f32 %v600_v6, 0.0 }
 0x110   : >> { %v619_v60 = vmax.f32 %v603_v52, 0.0 }
 0x111   : >> { %v617_v62 = vmax.f32 %v601_v54, 0.0 }
 0x112   : >> { %v629_v63 = vpack.c.bf16 %v619_v60, %v618_v58 }
 0x113   : >> { %v1913_v7 = vpop.f32.mrb[12].mxu0  ;;  %v628_v8 = vpack.c.bf16 %v617_v62, %v616_v61 }
 0x114   : >> { %v606_v4 = vadd.f32 %v1913_v7, %v1805_v44  ;;  %v1917_v9 = vpop.f32.mrb[13].mxu0 }
 0x115   : >> { %v604_v10 = vadd.f32 %v1805_v44, %v1917_v9  ;;  %v1921_v48 = vpop.f32.mrb[14].mxu0  ;;  %1394 = vmatprep.mubr.bf16.mxu1 %v628_v8  ;;  %v1275_v8 = vcombine.low %v1715_v26, %v1720_v27 }
 0x116   : >> { %v607_v51 = vadd.f32 %v1921_v48, %v1805_v44  ;;  %v1925_v6 = vpop.f32.mrb[15].mxu0  ;;  %1395 = vmatmul.mubr.bf16.gmra.mrb[8].mxu1 %v629_v63  ;;  %v622_v54 = vmax.f32 %v606_v4, 0.0  ;;  %v1287_v63 = vcombine.low %v1735_v30, %v1740_v31  ;;  %v1941_v4 = vcombine.low %v1765_v36, %v1770_v37 }
 0x117   : >> { %v605_v52 = vadd.f32 %v1805_v44, %v1925_v6  ;;  %v620_v60 = vmax.f32 %v604_v10, 0.0  ;;  %1408 = vmatprep.subr.bf16.mxu0 %v1275_v8  ;;  %v1288_v10 = vcombine.low %v1745_v32, %v1750_v33 }
 0x118   : >> { %v623_v58 = vmax.f32 %v607_v51, 0.0  ;;  %1409 = vmatpush3.bf16.msra.mxu0 %v1275_v8  ;;  %1459 = vmatprep.subr.bf16.mxu1 %v1287_v63 }
 0x119   : >> { %v621_v61 = vmax.f32 %v605_v52, 0.0  ;;  %1426 = vmatprep.subr.bf16.mxu0 %v1286_v12  ;;  %1467 = vmatpush3.bf16.msra.mxu1 %v1287_v63 }
 0x11a   : >> { %v631_v62 = vpack.c.bf16 %v623_v58, %v622_v54  ;;  %1460 = vmatprep.subr.bf16.mxu1 %v1288_v10 }
 0x11b   : >> { %v630_v11 = vpack.c.bf16 %v621_v61, %v620_v60 }
 0x11d   : >> { %1398 = vmatprep.mubr.bf16.mxu1 %v630_v11  ;;  %v1289_v11 = vcombine.low %v1755_v34, %v1760_v35  ;;  %1468 = vmatpush3.bf16.msra.mxu1 %v1288_v10 }
 0x11e   : >> { %1399 = vmatmul.mubr.bf16.gmra.mrb[12].mxu1 %v631_v62 }
 0x11f   : >> { %1461 = vmatprep.subr.bf16.mxu1 %v1289_v11 }
 0x121   : >> { %1469 = vmatpush3.bf16.msra.mxu1 %v1289_v11 }
 0x122   : >> { %1462 = vmatprep.subr.bf16.mxu1 %v1941_v4 }
 0x125   : >> { %1470 = vmatpush3.bf16.msra.mxu1 %v1941_v4 }
 0x1d9   : >> { %v1388_v51 = vpop.f32.mrb[0].mxu1 }
 0x1da   : >> { %v729_v52 = vadd.f32 %v1388_v51, %v1810_v45  ;;  %v720_v54 = vpop.f32.mrb[1].mxu1 }
 0x1db   : >> { %v721_v58 = vadd.f32 %v1810_v45, %v720_v54  ;;  %v1389_v60 = vpop.f32.mrb[2].mxu1 }
 0x1dc   : >> { %v732_v61 = vadd.f32 %v1389_v60, %v1810_v45  ;;  %v723_v62 = vpop.f32.mrb[3].mxu1  ;;  %v785_v13 = vmax.f32 %v729_v52, 0.0 }
 0x1dd   : >> { %v724_v8 = vadd.f32 %v1810_v45, %v723_v62  ;;  %v783_v15 = vmax.f32 %v721_v58, 0.0 }
 0x1de   : >> { %v786_v14 = vmax.f32 %v732_v61, 0.0 }
 0x1df   : >> { %v784_v16 = vmax.f32 %v724_v8, 0.0 }
 0x1e0   : >> { %v800_v17 = vpack.c.bf16 %v786_v14, %v785_v13 }
 0x1e1   : >> { %v799_v18 = vpack.c.bf16 %v784_v16, %v783_v15  ;;  %v1392_v19 = vpop.f32.mrb[4].mxu1 }
 0x1e2   : >> { %v745_v20 = vadd.f32 %v1392_v19, %v1810_v45  ;;  %v736_v51 = vpop.f32.mrb[5].mxu1 }
 0x1e3   : >> { %v737_v21 = vadd.f32 %v1810_v45, %v736_v51  ;;  %v1393_v54 = vpop.f32.mrb[6].mxu1  ;;  %1410 = vmatprep.mubr.msk.bf16.mxu0 %vm831_vm1, %v799_v18 }
 0x1e4   : >> { %v748_v60 = vadd.f32 %v1393_v54, %v1810_v45  ;;  %v739_v22 = vpop.f32.mrb[7].mxu1  ;;  %1411 = vmatmul.mubr.msk.bf16.vlgmr.msra.gmra.mrb[16].mxu0 %vm831_vm1, %v800_v17  ;;  %v789_v13 = vmax.f32 %v745_v20, 0.0 }
 0x1e5   : >> { %v740_v52 = vadd.f32 %v1810_v45, %v739_v22  ;;  %1427 = vmatpush3.bf16.msra.mxu0 %v1286_v12  ;;  %v787_v15 = vmax.f32 %v737_v21, 0.0 }
 0x1e6   : >> { %v790_v14 = vmax.f32 %v748_v60, 0.0  ;;  %1428 = vmatprep.subr.bf16.mxu0 %v1287_v63 }
 0x1e7   : >> { %v788_v16 = vmax.f32 %v740_v52, 0.0 }
 0x1e8   : >> { %v802_v19 = vpack.c.bf16 %v790_v14, %v789_v13 }
 0x1e9   : >> { %v801_v58 = vpack.c.bf16 %v788_v16, %v787_v15  ;;  %v1396_v61 = vpop.f32.mrb[8].mxu1  ;;  %1429 = vmatpush3.bf16.msra.mxu0 %v1287_v63 }
 0x1ea   : >> { %v761_v62 = vadd.f32 %v1396_v61, %v1810_v45  ;;  %v752_v18 = vpop.f32.mrb[9].mxu1  ;;  %1430 = vmatprep.subr.bf16.mxu0 %v1288_v10 }
 0x1eb   : >> { %v753_v8 = vadd.f32 %v1810_v45, %v752_v18  ;;  %v1397_v51 = vpop.f32.mrb[10].mxu1  ;;  %1414 = vmatprep.mubr.msk.bf16.mxu0 %vm831_vm1, %v801_v58 }
 0x1ec   : >> { %v764_v12 = vadd.f32 %v1397_v51, %v1810_v45  ;;  %v755_v17 = vpop.f32.mrb[11].mxu1  ;;  %1415 = vmatmul.mubr.msk.bf16.gmra.mrb[20].mxu0 %vm831_vm1, %v802_v19  ;;  %v793_v21 = vmax.f32 %v761_v62, 0.0 }
 0x1ed   : >> { %v756_v20 = vadd.f32 %v1810_v45, %v755_v17  ;;  %1431 = vmatpush3.bf16.msra.mxu0 %v1288_v10  ;;  %v791_v63 = vmax.f32 %v753_v8, 0.0  ;;  %v1291_v17 = vcombine.low %v1775_v38, %v1780_v39 }
 0x1ee   : >> { %v794_v22 = vmax.f32 %v764_v12, 0.0  ;;  %1432 = vmatprep.subr.bf16.mxu0 %v1289_v11 }
 0x1ef   : >> { %v792_v54 = vmax.f32 %v756_v20, 0.0  ;;  %1463 = vmatprep.subr.bf16.mxu1 %v1291_v17  ;;  %v1293_v20 = vcombine.low %v1795_v42, %v1800_v43 }
 0x1f0   : >> { %v804_v60 = vpack.c.bf16 %v794_v22, %v793_v21  ;;  %1471 = vmatpush3.bf16.msra.mxu1 %v1291_v17 }
 0x1f1   : >> { %v803_v52 = vpack.c.bf16 %v792_v54, %v791_v63  ;;  %v1400_v13 = vpop.f32.mrb[12].mxu1  ;;  %1433 = vmatpush3.bf16.msra.mxu0 %v1289_v11 }
 0x1f2   : >> { %v777_v14 = vadd.f32 %v1400_v13, %v1810_v45  ;;  %v768_v15 = vpop.f32.mrb[13].mxu1  ;;  %1434 = vmatprep.subr.bf16.mxu0 %v1941_v4 }
 0x1f3   : >> { %v769_v16 = vadd.f32 %v1810_v45, %v768_v15  ;;  %v1401_v19 = vpop.f32.mrb[14].mxu1  ;;  %1418 = vmatprep.mubr.msk.bf16.mxu0 %vm831_vm1, %v803_v52 }
 0x1f4   : >> { %v780_v10 = vadd.f32 %v1401_v19, %v1810_v45  ;;  %v771_v58 = vpop.f32.mrb[15].mxu1  ;;  %1419 = vmatmul.mubr.msk.bf16.gmra.mrb[24].mxu0 %vm831_vm1, %v804_v60  ;;  %v797_v11 = vmax.f32 %v777_v14, 0.0 }
 0x1f5   : >> { %v772_v61 = vadd.f32 %v1810_v45, %v771_v58  ;;  %1435 = vmatpush3.bf16.msra.mxu0 %v1941_v4  ;;  %v795_v18 = vmax.f32 %v769_v16, 0.0  ;;  %v1292_v4 = vcombine.low %v1785_v40, %v1790_v41 }
 0x1f6   : >> { %v798_v62 = vmax.f32 %v780_v10, 0.0  ;;  %1436 = vmatprep.subr.bf16.mxu0 %v1291_v17 }
 0x1f7   : >> { %v796_v8 = vmax.f32 %v772_v61, 0.0  ;;  %1464 = vmatprep.subr.bf16.mxu1 %v1292_v4 }
 0x1f8   : >> { %v806_v51 = vpack.c.bf16 %v798_v62, %v797_v11  ;;  %1472 = vmatpush3.bf16.msra.mxu1 %v1292_v4 }
 0x1f9   : >> { %v805_v12 = vpack.c.bf16 %v796_v8, %v795_v18  ;;  %1437 = vmatpush3.bf16.msra.mxu0 %v1291_v17  ;;  %1465 = vmatprep.subr.bf16.mxu1 %v1293_v20 }
 0x1fa   : >> { %1438 = vmatprep.subr.bf16.mxu0 %v1292_v4 }
 0x1fb   : >> { %1422 = vmatprep.mubr.msk.bf16.mxu0 %vm831_vm1, %v805_v12 }
 0x1fc   : >> { %1423 = vmatmul.mubr.msk.bf16.gmra.mrb[28].mxu0 %vm831_vm1, %v806_v51  ;;  %1473 = vmatpush3.bf16.msra.mxu1 %v1293_v20 }
 0x1fd   : >> { %1439 = vmatpush3.bf16.msra.mxu0 %v1292_v4 }
 0x1fe   : >> { %1440 = vmatprep.subr.bf16.mxu0 %v1293_v20 }
 0x201   : >> { %1441 = vmatpush3.bf16.msra.mxu0 %v1293_v20 }
 0x2b7   : >> { %v1412_v21 = vpop.f32.mrb[16].mxu0 }
 0x2b8   : >> { %v899_v22 = vadd.f32 %v1412_v21, %v1865_v53  ;;  %v890_v63 = vpop.f32.mrb[17].mxu0 }
 0x2b9   : >> { %v891_v54 = vadd.f32 %v890_v63, %v1869_v55  ;;  %v1413_v60 = vpop.f32.mrb[18].mxu0 }
 0x2ba   : >> { %v961_v52 = vadd.f32 %v1815_v46, %v899_v22  ;;  %v902_v13 = vadd.f32 %v1413_v60, %v1873_v57  ;;  %v893_v14 = vpop.f32.mrb[19].mxu0 }
 0x2bb   : >> { %v959_v15 = vadd.f32 %v1815_v46, %v891_v54  ;;  %v894_v16 = vadd.f32 %v893_v14, %v1877_v59 }
 0x2bc   : >> { %v962_v19 = vadd.f32 %v1815_v46, %v902_v13  ;;  %v977_v58 = vmax.f32 %v961_v52, 0.0 }
 0x2bd   : >> { %v960_v10 = vadd.f32 %v1815_v46, %v894_v16  ;;  %v975_v53 = vmax.f32 %v959_v15, 0.0 }
 0x2be   : >> { %v978_v61 = vmax.f32 %v962_v19, 0.0 }
 0x2bf   : >> { %v976_v11 = vmax.f32 %v960_v10, 0.0  ;;  %v1416_v62 = vpop.f32.mrb[20].mxu0 }
 0x2c0   : >> { %v992_v55 = vpack.c.bf16 %v978_v61, %v977_v58  ;;  %v915_v18 = vadd.f32 %v1416_v62, %v1881_v50  ;;  %v906_v8 = vpop.f32.mrb[21].mxu0 }
 0x2c1   : >> { %v991_v51 = vpack.c.bf16 %v976_v11, %v975_v53  ;;  %v907_v57 = vadd.f32 %v906_v8, %v1885_v0  ;;  %v1417_v12 = vpop.f32.mrb[22].mxu0 }
 0x2c2   : >> { %v965_v17 = vadd.f32 %v1815_v46, %v915_v18  ;;  %v918_v59 = vadd.f32 %v1417_v12, %v1889_v2  ;;  %v909_v4 = vpop.f32.mrb[23].mxu0 }
 0x2c3   : >> { %v963_v20 = vadd.f32 %v1815_v46, %v907_v57  ;;  %v910_v21 = vadd.f32 %v909_v4, %v1893_v56  ;;  %1442 = vmatprep.mubr.bf16.mxu0 %v991_v51 }
 0x2c4   : >> { %v966_v22 = vadd.f32 %v1815_v46, %v918_v59  ;;  %1443 = vmatmul.mubr.bf16.vlgmr.msra.gmra.mrb[32].mxu0 %v992_v55  ;;  %v981_v63 = vmax.f32 %v965_v17, 0.0 }
 0x2c5   : >> { %v964_v50 = vadd.f32 %v1815_v46, %v910_v21  ;;  %v979_v60 = vmax.f32 %v963_v20, 0.0 }
 0x2c6   : >> { %v982_v54 = vmax.f32 %v966_v22, 0.0 }
 0x2c7   : >> { %v980_v0 = vmax.f32 %v964_v50, 0.0  ;;  %v1420_v52 = vpop.f32.mrb[24].mxu0 }
 0x2c8   : >> { %v994_v13 = vpack.c.bf16 %v982_v54, %v981_v63  ;;  %v931_v14 = vadd.f32 %v1420_v52, %v1897_v3  ;;  %v922_v2 = vpop.f32.mrb[25].mxu0 }
 0x2c9   : >> { %v993_v15 = vpack.c.bf16 %v980_v0, %v979_v60  ;;  %v923_v16 = vadd.f32 %v922_v2, %v1901_v5  ;;  %v1421_v19 = vpop.f32.mrb[26].mxu0 }
 0x2ca   : >> { %v969_v56 = vadd.f32 %v1815_v46, %v931_v14  ;;  %v934_v10 = vadd.f32 %v1421_v19, %v1905_v49  ;;  %v925_v58 = vpop.f32.mrb[27].mxu0 }
 0x2cb   : >> { %v967_v61 = vadd.f32 %v1815_v46, %v923_v16  ;;  %v926_v53 = vadd.f32 %v925_v58, %v1909_v1  ;;  %1446 = vmatprep.mubr.bf16.mxu1 %v993_v15 }
 0x2cc   : >> { %v970_v11 = vadd.f32 %v1815_v46, %v934_v10  ;;  %1447 = vmatmul.mubr.bf16.vlgmr.msra.gmra.mrb[16].mxu1 %v994_v13  ;;  %v985_v62 = vmax.f32 %v969_v56, 0.0 }
 0x2cd   : >> { %v968_v3 = vadd.f32 %v1815_v46, %v926_v53  ;;  %v983_v18 = vmax.f32 %v967_v61, 0.0 }
 0x2ce   : >> { %v986_v55 = vmax.f32 %v970_v11, 0.0 }
 0x2cf   : >> { %v984_v5 = vmax.f32 %v968_v3, 0.0  ;;  %v1424_v8 = vpop.f32.mrb[28].mxu0 }
 0x2d0   : >> { %v996_v51 = vpack.c.bf16 %v986_v55, %v985_v62  ;;  %v947_v57 = vadd.f32 %v1424_v8, %v1913_v7  ;;  %v938_v49 = vpop.f32.mrb[29].mxu0 }
 0x2d1   : >> { %v995_v12 = vpack.c.bf16 %v984_v5, %v983_v18  ;;  %v939_v17 = vadd.f32 %v938_v49, %v1917_v9  ;;  %v1425_v59 = vpop.f32.mrb[30].mxu0 }
 0x2d2   : >> { %v973_v1 = vadd.f32 %v1815_v46, %v947_v57  ;;  %v950_v4 = vadd.f32 %v1425_v59, %v1921_v48  ;;  %v941_v20 = vpop.f32.mrb[31].mxu0 }
 0x2d3   : >> { %v971_v21 = vadd.f32 %v1815_v46, %v939_v17  ;;  %v942_v22 = vadd.f32 %v941_v20, %v1925_v6  ;;  %1450 = vmatprep.mubr.bf16.mxu1 %v995_v12 }
 0x2d4   : >> { %v974_v50 = vadd.f32 %v1815_v46, %v950_v4  ;;  %1451 = vmatmul.mubr.bf16.gmra.mrb[20].mxu1 %v996_v51  ;;  %v989_v63 = vmax.f32 %v973_v1, 0.0 }
 0x2d5   : >> { %v972_v7 = vadd.f32 %v1815_v46, %v942_v22  ;;  %v987_v54 = vmax.f32 %v971_v21, 0.0 }
 0x2d6   : >> { %v990_v9 = vmax.f32 %v974_v50, 0.0 }
 0x2d7   : >> { %v988_v60 = vmax.f32 %v972_v7, 0.0 }
 0x2d8   : >> { %v998_v0 = vpack.c.bf16 %v990_v9, %v989_v63 }
 0x2d9   : >> { %v997_v52 = vpack.c.bf16 %v988_v60, %v987_v54 }
 0x2db   : >> { %1454 = vmatprep.mubr.bf16.mxu1 %v997_v52 }
 0x2dc   : >> { %1455 = vmatmul.mubr.bf16.gmra.mrb[24].mxu1 %v998_v0 }
 0x397   : >> { %v1444_v48 = vpop.f32.mrb[32].mxu0 }
 0x398   : >> { %v1096_v6 = vadd.f32 %v1444_v48, %v1820_v47  ;;  %v1087_v13 = vpop.f32.mrb[33].mxu0 }
 0x399   : >> { %v1088_v14 = vadd.f32 %v1820_v47, %v1087_v13  ;;  %v1445_v2 = vpop.f32.mrb[34].mxu0 }
 0x39a   : >> { %1154 = vst.msk [vmem:[%s2012_s29 + $0x10] sm:$0xff] %vm1151_vm2, %v1096_v6  ;;  %v1099_v15 = vadd.f32 %v1445_v2, %v1820_v47  ;;  %v1090_v16 = vpop.f32.mrb[35].mxu0 }
 0x39b   : >> { %1152 = vst.msk [vmem:[%s2012_s29] sm:$0xff] %vm1151_vm2, %v1088_v14  ;;  %v1091_v19 = vadd.f32 %v1820_v47, %v1090_v16 }
 0x39c   : >> { %1155 = vst.msk [vmem:[%s2012_s29 + $0x18] sm:$0xff] %vm1151_vm2, %v1099_v15 }
 0x39d   : >> { %1153 = vst.msk [vmem:[%s2012_s29 + $0x8] sm:$0xff] %vm1151_vm2, %v1091_v19 }
 0x39f   : >> { %v1448_v56 = vpop.f32.mrb[16].mxu1 }
 0x3a0   : >> { %v1112_v10 = vadd.f32 %v1448_v56, %v1820_v47  ;;  %v1103_v58 = vpop.f32.mrb[17].mxu1 }
 0x3a1   : >> { %v1104_v61 = vadd.f32 %v1820_v47, %v1103_v58  ;;  %v1449_v53 = vpop.f32.mrb[18].mxu1 }
 0x3a2   : >> { %1158 = vst.msk [vmem:[%s2012_s29 + $0x30] sm:$0xff] %vm1151_vm2, %v1112_v10  ;;  %v1115_v11 = vadd.f32 %v1449_v53, %v1820_v47  ;;  %v1106_v3 = vpop.f32.mrb[19].mxu1 }
 0x3a3   : >> { %1156 = vst.msk [vmem:[%s2012_s29 + $0x20] sm:$0xff] %vm1151_vm2, %v1104_v61  ;;  %v1107_v62 = vadd.f32 %v1820_v47, %v1106_v3 }
 0x3a4   : >> { %1159 = vst.msk [vmem:[%s2012_s29 + $0x38] sm:$0xff] %vm1151_vm2, %v1115_v11 }
 0x3a5   : >> { %1157 = vst.msk [vmem:[%s2012_s29 + $0x28] sm:$0xff] %vm1151_vm2, %v1107_v62 }
 0x3a7   : >> { %v1452_v55 = vpop.f32.mrb[20].mxu1 }
 0x3a8   : >> { %v1128_v18 = vadd.f32 %v1452_v55, %v1820_v47  ;;  %v1119_v5 = vpop.f32.mrb[21].mxu1 }
 0x3a9   : >> { %v1120_v8 = vadd.f32 %v1820_v47, %v1119_v5  ;;  %v1453_v51 = vpop.f32.mrb[22].mxu1 }
 0x3aa   : >> { %1162 = vst.msk [vmem:[%s2012_s29 + $0x50] sm:$0xff] %vm1151_vm2, %v1128_v18  ;;  %v1131_v57 = vadd.f32 %v1453_v51, %v1820_v47  ;;  %v1122_v49 = vpop.f32.mrb[23].mxu1 }
 0x3ab   : >> { %1160 = vst.msk [vmem:[%s2012_s29 + $0x40] sm:$0xff] %vm1151_vm2, %v1120_v8  ;;  %v1123_v12 = vadd.f32 %v1820_v47, %v1122_v49 }
 0x3ac   : >> { %1163 = vst.msk [vmem:[%s2012_s29 + $0x58] sm:$0xff] %vm1151_vm2, %v1131_v57 }
 0x3ad   : >> { %1161 = vst.msk [vmem:[%s2012_s29 + $0x48] sm:$0xff] %vm1151_vm2, %v1123_v12 }
 0x3af   : >> { %v1456_v17 = vpop.f32.mrb[24].mxu1  ;;  %389 = sbr.rel (!%p387_p4) target bundleno = 29 (0x1d), region = 95 }
 0x3b0   : >> { %v1144_v59 = vadd.f32 %v1456_v17, %v1820_v47  ;;  %v1135_v1 = vpop.f32.mrb[25].mxu1 }
 0x3b1   : >> { %v1136_v4 = vadd.f32 %v1820_v47, %v1135_v1  ;;  %v1457_v20 = vpop.f32.mrb[26].mxu1 }
 0x3b2   : >> { %1166 = vst.msk [vmem:[%s2012_s29 + $0x70] sm:$0xff] %vm1151_vm2, %v1144_v59  ;;  %v1147_v21 = vadd.f32 %v1457_v20, %v1820_v47  ;;  %v1138_v22 = vpop.f32.mrb[27].mxu1 }
 0x3b3   : >> { %1164 = vst.msk [vmem:[%s2012_s29 + $0x60] sm:$0xff] %vm1151_vm2, %v1136_v4  ;;  %v1139_v50 = vadd.f32 %v1820_v47, %v1138_v22 }
 0x3b4   : >> { %1167 = vst.msk [vmem:[%s2012_s29 + $0x78] sm:$0xff] %vm1151_vm2, %v1147_v21 }
 0x3b5   : >> { %1165 = vst.msk [vmem:[%s2012_s29 + $0x68] sm:$0xff] %vm1151_vm2, %v1139_v50 }
 0x3b6 PF: > { %s19_s30 = sadd.s32 1, %s1508_s30  }
 0x3b7   : > { %p16_p5 = scmp.ge.s32.totalorder %s19_s30, 4  }
 0x3b9   :  { %18 = sbr.rel (!%p16_p5) target bundleno = 1 (0x1), region = 106 }

</bundles_post_ra>
